<compile_context>
chip_gen: v7x
topology: tpu7x:2x2x1
jax: 0.10.0
libtpu: 0.0.40
codegen_flags: <defaults>
</compile_context>

<pallas_src>
import functools

import jax
import jax.numpy as jnp
from jax import lax
from jax.experimental import pallas as pl
from jax.experimental.pallas import tpu as pltpu


def _masked_nll_kernel(pred_ref, tgt_ref, mask_ref, *rest, n_rows, tm, use_weight):
    if use_weight:
        wt_ref, out_ref = rest
    else:
        (out_ref,) = rest

    i = pl.program_id(0)

    pred = pred_ref[...]                                   # (tm, C) native dtype
    tgt = tgt_ref[...]                                     # (tm, 1) i32
    mask = mask_ref[...]                                   # (tm, 1) f32

    # Validity gate for the ragged tail block (inputs are NOT padded on host; the tail of
    # the last block holds unspecified data, possibly NaN/Inf).
    row = i * tm + lax.broadcasted_iota(jnp.int32, (tm, 1), 0)
    valid = row < n_rows                                   # (tm, 1) bool
    m = jnp.where(valid, mask, 0.0)                        # (tm, 1) f32

    # One-hot select of pred[r, tgt[r]]: (1, C) iota broadcast against (tm, 1) targets.
    # Exactly one non-zero per row -> the native-dtype sum is exact; widen only the
    # (tm, 1) result.
    cls = lax.broadcasted_iota(jnp.int32, (1, pred.shape[1]), 1)   # (1, C)
    sel = cls == tgt                                       # (tm, C) bool (broadcast)
    picked = jnp.sum(jnp.where(sel, pred, 0), axis=-1,
                     keepdims=True).astype(jnp.float32)    # (tm, 1) f32
    picked = jnp.where(valid, picked, 0.0)                 # gate tail garbage (NaN-safe)

    if use_weight:
        wt = jnp.where(valid, wt_ref[...], 0.0)            # (tm, 1) f32, = weight[target]
        num_rows = -(wt * m * picked)
        den_rows = wt * m
    else:
        num_rows = -(m * picked)
        den_rows = m                                       # sum(mask) exactly, as in PyTorch

    num = jnp.sum(num_rows)
    den = jnp.sum(den_rows)

    # Per-block partials: sublane 0 carries num, sublane 1 carries den (lane-dense store).
    sub = lax.broadcasted_iota(jnp.int32, (8, 128), 0)
    out_ref[0] = jnp.where(sub == 0, num, jnp.where(sub == 1, den, 0.0))


def _pick_tm(n, c, itemsize):
    """Largest row tile whose VMEM footprint stays v7x-safe (64 MiB per TensorCore).

    Budget: ~16 MiB for the double-buffered pred window (8 MiB per buffer); the in-kernel
    select mask + selected copy add roughly another 2x tile, keeping the total well under
    the 48 MiB vmem limit even when the grid is sharded per-core on v7x.
    """
    budget = 16 * 1024 * 1024
    tm = budget // (2 * c * itemsize)
    align = {4: 8, 2: 16, 1: 32}.get(itemsize, 8)
    tm = max(align, min(int(tm), 32768))
    tm = (tm // align) * align
    n_up = ((n + align - 1) // align) * align
    return min(tm, n_up)


def masked_nll_loss(pred, target, mask, weight=None):
    """pred: (N, C) log-probs (any float dtype), target: (N,) int, mask: (B, L), B*L == N."""
    n, c = pred.shape
    itemsize = jnp.dtype(pred.dtype).itemsize
    tm = _pick_tm(n, c, itemsize)
    grid = pl.cdiv(n, tm)

    tgt_ = target.reshape(n, 1).astype(jnp.int32)
    mask_ = mask.reshape(n, 1).astype(jnp.float32)
    use_weight = weight is not None

    in_specs = [
        pl.BlockSpec((tm, c), lambda i: (i, 0)),   # pred tile (native dtype)
        pl.BlockSpec((tm, 1), lambda i: (i, 0)),   # target tile
        pl.BlockSpec((tm, 1), lambda i: (i, 0)),   # mask tile
    ]
    args = [pred, tgt_, mask_]
    extra_bytes = 0
    if use_weight:
        # Host-side gather weight[target]: n*4 extra HBM bytes instead of a second
        # full (tm, C) select + lane reduce in the kernel.
        wt_ = weight.astype(jnp.float32)[target].reshape(n, 1)
        in_specs.append(pl.BlockSpec((tm, 1), lambda i: (i, 0)))
        args.append(wt_)
        extra_bytes = n * 4

    kernel = functools.partial(_masked_nll_kernel, n_rows=n, tm=tm,
                               use_weight=use_weight)

    partials = pl.pallas_call(
        kernel,
        out_shape=jax.ShapeDtypeStruct((grid, 8, 128), jnp.float32),
        grid_spec=pltpu.PrefetchScalarGridSpec(
            num_scalar_prefetch=0,
            grid=(grid,),
            in_specs=in_specs,
            out_specs=pl.BlockSpec((1, 8, 128), lambda i: (i, 0, 0)),
        ),
        compiler_params=pltpu.CompilerParams(
            dimension_semantics=("parallel",),            # megacore-shardable on v7x
            vmem_limit_bytes=48 * 1024 * 1024),
        cost_estimate=pl.CostEstimate(
            flops=3 * n * c,
            transcendentals=0,
            bytes_accessed=n * c * itemsize + n * 8 + extra_bytes
                           + grid * 8 * 128 * 4),
    )(*args)

    num = jnp.sum(partials[:, 0, 0])
    den = jnp.sum(partials[:, 1, 0])
    return num / den


if __name__ == "__main__":
    key = jax.random.PRNGKey(0)
    B, L, C = 2, 8, 32
    N = B * L
    k1, k2, k3, k4 = jax.random.split(key, 4)

    logits = jax.random.normal(k1, (N, C), jnp.float32)
    pred = jax.nn.log_softmax(logits, axis=-1)                          # (batch*seq_len, n_classes)
    target = jax.random.randint(k2, (N,), 0, C)                         # (batch*seq_len,)
    mask = (jax.random.uniform(k3, (B, L)) > 0.3).astype(jnp.float32)   # (batch, seq_len)
    class_weight = 0.5 + jax.random.uniform(k4, (C,), jnp.float32)

    loss_none = masked_nll_loss(pred, target, mask, weight=None)
    loss_w = masked_nll_loss(pred, target, mask, weight=class_weight)

    # bf16 pred path exercises the native-dtype select (exact: one non-zero per row)
    loss_bf16 = masked_nll_loss(pred.astype(jnp.bfloat16), target, mask, weight=None)
    jax.block_until_ready((loss_none, loss_w, loss_bf16))

    # pure-JAX reference (mirrors the PyTorch forward)
    mflat = mask.reshape(-1)
    picked = pred[jnp.arange(N), target]
    ref_none = jnp.sum(-picked * mflat) / jnp.sum(mask)
    wt = class_weight[target]
    ref_w = jnp.sum(-wt * picked * mflat) / jnp.sum(wt * mflat)
    picked_bf16 = pred.astype(jnp.bfloat16)[jnp.arange(N), target].astype(jnp.float32)
    ref_bf16 = jnp.sum(-picked_bf16 * mflat) / jnp.sum(mask)

    assert jnp.allclose(loss_none, ref_none, atol=1e-5, rtol=1e-5)
    assert jnp.allclose(loss_w, ref_w, atol=1e-5, rtol=1e-5)
    assert jnp.allclose(loss_bf16, ref_bf16, atol=1e-5, rtol=1e-5)
    print("KERNEL_OK")
</pallas_src>

<mosaic_0001>
module attributes {stable_mosaic.version = 11 : i64} {
  func.func @_masked_nll_kernel(%arg0: i32, %arg1: memref<16x32xf32, #tpu.memory_space<vmem>>, %arg2: memref<16x1xi32, #tpu.memory_space<vmem>>, %arg3: memref<16x1xf32, #tpu.memory_space<vmem>>, %arg4: memref<1x8x128xf32, #tpu.memory_space<vmem>>) attributes {dimension_semantics = [#tpu.dimension_semantics<parallel>], iteration_bounds = array<i64: 1>, scalar_prefetch = 0 : i64, scratch_operands = 0 : i64, tpu.core_type = #tpu.core_type<tc>, window_params = [{transform_indices = @transform_0, window_bounds = array<i64: 16, 32>}, {transform_indices = @transform_1, window_bounds = array<i64: 16, 1>}, {transform_indices = @transform_2, window_bounds = array<i64: 16, 1>}, {transform_indices = @transform_3, window_bounds = array<i64: 1, 8, 128>}]} {
    %c0 = arith.constant 0 : index
    %c0_0 = arith.constant 0 : index
    %0 = vector.load %arg1[%c0, %c0_0] : memref<16x32xf32, #tpu.memory_space<vmem>>, vector<16x32xf32>
    %c0_1 = arith.constant 0 : index
    %c0_2 = arith.constant 0 : index
    %1 = vector.load %arg2[%c0_1, %c0_2] : memref<16x1xi32, #tpu.memory_space<vmem>>, vector<16x1xi32>
    %c0_3 = arith.constant 0 : index
    %c0_4 = arith.constant 0 : index
    %2 = vector.load %arg3[%c0_3, %c0_4] : memref<16x1xf32, #tpu.memory_space<vmem>>, vector<16x1xf32>
    %c16_i32 = arith.constant 16 : i32
    %3 = arith.muli %arg0, %c16_i32 : i32
    %4 = tpu.iota {dimensions = array<i32: 0>} : vector<16x1xi32>
    %5 = vector.broadcast %3 : i32 to vector<16x1xi32>
    %6 = arith.addi %5, %4 : vector<16x1xi32>
    %c16_i32_5 = arith.constant 16 : i32
    %7 = vector.broadcast %c16_i32_5 : i32 to vector<16x1xi32>
    %8 = arith.cmpi slt, %6, %7 : vector<16x1xi32>
    %cst = arith.constant 0.000000e+00 : f32
    %9 = vector.broadcast %cst : f32 to vector<16x1xf32>
    %10 = arith.select %8, %2, %9 : vector<16x1xi1>, vector<16x1xf32>
    %11 = tpu.iota {dimensions = array<i32: 1>} : vector<1x32xi32>
    %12 = vector.broadcast %11 : vector<1x32xi32> to vector<16x32xi32>
    %13 = vector.broadcast %1 : vector<16x1xi32> to vector<16x32xi32>
    %14 = arith.cmpi eq, %12, %13 : vector<16x32xi32>
    %c0_i32 = arith.constant 0 : i32
    %15 = arith.sitofp %c0_i32 : i32 to f32
    %16 = vector.broadcast %15 : f32 to vector<16x32xf32>
    %17 = arith.select %14, %0, %16 : vector<16x32xi1>, vector<16x32xf32>
    %cst_6 = arith.constant dense<0.000000e+00> : vector<16xf32>
    %18 = vector.multi_reduction <add>, %17, %cst_6 [1] : vector<16x32xf32> to vector<16xf32>
    %19 = vector.shape_cast %18 : vector<16xf32> to vector<16x1xf32>
    %cst_7 = arith.constant 0.000000e+00 : f32
    %20 = vector.broadcast %cst_7 : f32 to vector<16x1xf32>
    %21 = arith.select %8, %19, %20 : vector<16x1xi1>, vector<16x1xf32>
    %22 = arith.mulf %10, %21 : vector<16x1xf32>
    %cst_8 = arith.constant 0.000000e+00 : f32
    %23 = vector.broadcast %cst_8 : f32 to vector<16x1xf32>
    %24 = arith.subf %23, %22 : vector<16x1xf32>
    %25 = vector.shape_cast %24 : vector<16x1xf32> to vector<1x16x1xf32>
    %cst_9 = arith.constant dense<0.000000e+00> : vector<1xf32>
    %26 = vector.multi_reduction <add>, %25, %cst_9 [1, 2] : vector<1x16x1xf32> to vector<1xf32>
    %27 = vector.shape_cast %26 : vector<1xf32> to vector<1x1x1xf32>
    %28 = vector.extract %27[0, 0, 0] : f32 from vector<1x1x1xf32>
    %29 = vector.shape_cast %10 : vector<16x1xf32> to vector<1x16x1xf32>
    %cst_10 = arith.constant dense<0.000000e+00> : vector<1xf32>
    %30 = vector.multi_reduction <add>, %29, %cst_10 [1, 2] : vector<1x16x1xf32> to vector<1xf32>
    %31 = vector.shape_cast %30 : vector<1xf32> to vector<1x1x1xf32>
    %32 = vector.extract %31[0, 0, 0] : f32 from vector<1x1x1xf32>
    %33 = tpu.iota {dimensions = array<i32: 0>} : vector<8x128xi32>
    %c0_i32_11 = arith.constant 0 : i32
    %34 = vector.broadcast %c0_i32_11 : i32 to vector<8x128xi32>
    %35 = arith.cmpi eq, %33, %34 : vector<8x128xi32>
    %c1_i32 = arith.constant 1 : i32
    %36 = vector.broadcast %c1_i32 : i32 to vector<8x128xi32>
    %37 = arith.cmpi eq, %33, %36 : vector<8x128xi32>
    %cst_12 = arith.constant 0.000000e+00 : f32
    %38 = vector.broadcast %32 : f32 to vector<8x128xf32>
    %39 = vector.broadcast %cst_12 : f32 to vector<8x128xf32>
    %40 = arith.select %37, %38, %39 : vector<8x128xi1>, vector<8x128xf32>
    %41 = vector.broadcast %28 : f32 to vector<8x128xf32>
    %42 = arith.select %35, %41, %40 : vector<8x128xi1>, vector<8x128xf32>
    %c0_13 = arith.constant 0 : index
    %c0_14 = arith.constant 0 : index
    %c0_15 = arith.constant 0 : index
    %43 = vector.load %arg4[%c0_13, %c0_14, %c0_15] : memref<1x8x128xf32, #tpu.memory_space<vmem>>, vector<1x8x128xf32>
    %44 = vector.shape_cast %43 : vector<1x8x128xf32> to vector<8x128xf32>
    %45 = vector.shape_cast %42 : vector<8x128xf32> to vector<1x8x128xf32>
    tpu.vector_store %arg4[%c0_13, %c0_14, %c0_15], %45 {strides = array<i32>} : memref<1x8x128xf32, #tpu.memory_space<vmem>>, vector<1x8x128xf32>,
    return
  }
  func.func @transform_0(%arg0: i32) -> (i32, i32) {
    %c0_i32 = arith.constant 0 : i32
    %c0_i32_0 = arith.constant 0 : i32
    return %arg0, %c0_i32 : i32, i32
  }
  func.func @transform_1(%arg0: i32) -> (i32, i32) {
    %c0_i32 = arith.constant 0 : i32
    %c0_i32_0 = arith.constant 0 : i32
    return %arg0, %c0_i32 : i32, i32
  }
  func.func @transform_2(%arg0: i32) -> (i32, i32) {
    %c0_i32 = arith.constant 0 : i32
    %c0_i32_0 = arith.constant 0 : i32
    return %arg0, %c0_i32 : i32, i32
  }
  func.func @transform_3(%arg0: i32) -> (i32, i32, i32) {
    %c0_i32 = arith.constant 0 : i32
    %c0_i32_0 = arith.constant 0 : i32
    %c0_i32_1 = arith.constant 0 : i32
    return %arg0, %c0_i32, %c0_i32_0 : i32, i32, i32
  }
}

</mosaic_0001>

<bundles_post_ra>
// kernel: tpu_custom_call.1
= control target key start
LH: loop header
LB: loop body
LE: loop exit
PB: predicated region body
PF: predicated region fallthrough
CT: control target
= control target key end

     0   :  { %s186_s0 = inlined_call_operand.vmem [shape: f32[16,32], index: 0, kind: input, shape index: {}]   ;;  %s187_s1 = inlined_call_operand.vmem [shape: s32[16,1], index: 1, kind: input, shape index: {}]   ;;  %s188_s2 = inlined_call_operand.vmem [shape: f32[16,1], index: 2, kind: input, shape index: {}]   ;;  %s189_s3 = inlined_call_operand.hbm [shape: f32[1,8,128], index: 3, kind: output, shape index: {}]  }
   0x1   :  { %v17_v0 = vld [vmem:[%s187_s1] sm:$0xff] }
   0x2   :  { %8 = vsyncpa [#allocation3], 0  ;;  %v134_v1 = vmov 0   ;;  %v18_v2 = vld [vmem:[%s187_s1 + $0x8] sm:$0xff]  ;;  %v22_v3 = vlaneseq  ;;  %v15_v5 = vld [vmem:[%s186_s0] sm:$0xff]  ;;  %vm44_vm0 = vcmask 261120  }
   0x3   :  { %109 = vset.pattern.permute.xlu0 %v134_v1  ;;  %v16_v9 = vld [vmem:[%s186_s0 + $0x8] sm:$0xff]  ;;  %v19_v13 = vld [vmem:[%s188_s2] sm:$0xff]  ;;  %vm57_vm3 = vcmask 7168  }
   0x4   :  { %35 = vperm.xlu0 %109, %v17_v0   ;;  %v33_v4 = vand.u32 127, %v22_v3  ;;  %v20_v14 = vld [vmem:[%s188_s2 + $0x8] sm:$0xff]  ;;  %v70_v15 = vsel %vm57_vm3, %v19_v13, 0.0  ;;  %v23_v41 = vshrl.u32 %v22_v3, 7  ;;  %s135_s2 = smov [#allocation2]  }
   0x5   :  { %v71_v16 = vsel %vm57_vm3, %v20_v14, 0.0  ;;  %s95_s23 = sshll.u32 %s135_s2, 4  ;;  %s96_s23 = int_to_ptr.vmem [resolvable:$true] %s95_s23 }
   0x6   :  { %v72_v17 = vadd.f32 %v71_v16, %v70_v15  ;;  %vm83_vm4 = vcmp.eq.s32.totalorder %v23_v41, 1  ;;  %vm82_vm5 = vcmp.eq.s32.totalorder %v23_v41, 0  ;;  %s110_s25 = scalar_lea.vmem %s96_s23, 128  ;;  %p115_p1 = scmp.lt.s32.totalorder %s96_s23, %s96_s23 }
   0x7   :  { %p111_p0 = scmp.ne.s32.totalorder %s96_s23, %s110_s25  ;;  %p116_p2 = scmp.lt.s32.totalorder %s110_s25, %s110_s25 }
   0x8   :  { %38 = vperm.xlu0 %109, %v18_v2  }
   0x9   :  { %p117_p3 = por %p116_p2, %p115_p1 }
   0xb   :  { %p118_p4 = pnand %p117_p3, %p111_p0 }
  0x83   :  { %v36_v6 = vpop.permute.xlu0 %35 }
  0x84   :  { %vm40_vm1 = vcmp.eq.s32.totalorder %v33_v4, %v36_v6 }
  0x85   :  { %v42_v7 = vsel %vm40_vm1, %v15_v5, 0.0 }
  0x86   :  { %v45_v8 = vsel %vm44_vm0, %v42_v7, 0.0 }
  0x87   :  { %v39_v10 = vpop.permute.xlu0 %38  ;;  %46 = vadd.xlane.f32.xlu1 %v45_v8 }
  0x88   :  { %vm41_vm2 = vcmp.eq.s32.totalorder %v33_v4, %v39_v10 }
  0x89   :  { %v43_v11 = vsel %vm41_vm2, %v16_v9, 0.0 }
  0x8a   :  { %v48_v12 = vsel %vm44_vm0, %v43_v11, 0.0 }
  0x8b   :  { %49 = vadd.xlane.f32.xlu1 %v48_v12 }
  0x8f   :  { %73 = vadd.xlane.f32.xlu1 %v72_v17 }
 0x114   :  { %v47_v18 = vpop.xlane.xlu1 %46 }
 0x115   :  { %v53_v19 = vmul.f32 %v47_v18, %v19_v13 }
 0x117   :  { %v55_v21 = vsub.f32 0.0, %v53_v19 }
 0x118   :  { %v50_v20 = vpop.xlane.xlu1 %49 }
 0x119   :  { %v54_v22 = vmul.f32 %v50_v20, %v20_v14  ;;  %v58_v24 = vsel %vm57_vm3, %v55_v21, 0.0 }
 0x11b   :  { %v56_v23 = vsub.f32 0.0, %v54_v22 }
 0x11c   :  { %v74_v27 = vpop.xlane.xlu1 %73 }
 0x11d   :  { %v59_v25 = vsel %vm57_vm3, %v56_v23, 0.0  ;;  %v75_v28 = vrot.slane %v74_v27, 4 }
 0x11e   :  { %v60_v26 = vadd.f32 %v59_v25, %v58_v24 }
 0x11f   :  { %v76_v29 = vadd.f32 %v75_v28, %v74_v27 }
 0x120   :  { %61 = vadd.xlane.f32.xlu0 %v60_v26 }
 0x121   :  { %v77_v30 = vrot.slane %v76_v29, 2 }
 0x123   :  { %v78_v34 = vadd.f32 %v77_v30, %v76_v29 }
 0x125   :  { %v79_v37 = vrot.slane %v78_v34, 1 }
 0x127   :  { %v80_v40 = vadd.f32 %v79_v37, %v78_v34 }
 0x1ad   :  { %v62_v31 = vpop.xlane.xlu0 %61 }
 0x1ae   :  { %v63_v32 = vrot.slane %v62_v31, 4 }
 0x1b0   :  { %v64_v33 = vadd.f32 %v63_v32, %v62_v31 }
 0x1b2   :  { %v65_v35 = vrot.slane %v64_v33, 2 }
 0x1b4   :  { %v66_v36 = vadd.f32 %v65_v35, %v64_v33 }
 0x1b6   :  { %v67_v38 = vrot.slane %v66_v36, 1 }
 0x1b8   :  { %v68_v39 = vadd.f32 %v67_v38, %v66_v36 }
 0x1ba   :  { %103 = vpush %v68_v39 }
 0x1bb   :  { %105 = vpush %v80_v40 }
 0x1eb   :  { %s104_s0 = spop %103 }
 0x1ec   :  { %v86_v42 = vstv %s104_s0  ;;  %s106_s24 = spop %105 }
 0x1ed   :  { %v84_v43 = vstv %s106_s24 }
 0x1ee   :  { %v85_v44 = vsel %vm83_vm4, %v84_v43, 0.0 }
 0x1ef   :  { %v87_v45 = vsel %vm82_vm5, %v86_v42, %v85_v44 }
 0x1f0   :  { %88 = vst [vmem:[#allocation2] sm:$0xff] %v87_v45 }
 0x1f1   :  { %121 = shalt.err (!%p118_p4)
}
 0x1f2   :  { %s122_s28 = scalar_lea.hbm %s189_s3, 128 }
 0x1f3   :  { %p123_p5 = scmp.ne.s32.totalorder %s189_s3, %s122_s28  ;;  %p126_p6 = scmp.lt.u32.totalorder %s122_s28, %s189_s3 }
 0x1f5   :  { %p128_p7 = pnand %p126_p6, %p123_p5 }
 0x1f7   :  { %131 = shalt.err (!%p128_p7)
}
 0x1f8   :  { %98 = dma.vmem_to_hbm [thread:$0]  %s96_s23, 128, %s189_s3, [#allocation3]  }
 0x1f9   :  { %132 = dma.done.wait [#allocation3], 128  }
 0x1fa   :  { %133 = vsyncadd [#allocation3], 4294967168 }
 0x1fb   :  { %102 = vsyncpa [#allocation3], 1 }

</bundles_post_ra>
